<compile_context>
chip_gen: v6e
topology: v6e:2x2x1
jax: 0.10.0
libtpu: 0.0.40
codegen_flags: <defaults>
</compile_context>

<pallas_src>
import jax
import jax.numpy as jnp
from jax.experimental import pallas as pl
from jax.experimental.pallas import tpu as pltpu

BN_EPS = 1e-5


def _round_up(x, m):
    return (x + m - 1) // m * m


def mlp_kernel(x_ref, w1_ref, gamma_ref, beta_ref, w2_ref, b2_ref, o_ref):
    k = pl.program_id(0)

    @pl.when(k == 0)
    def _():
        # The resident f32 output block is the accumulator; seed it with the
        # Linear2 bias so no final bias-add / copy pass is needed.
        o_ref[...] = jnp.broadcast_to(b2_ref[...], o_ref.shape)

    # Linear1, hidden column block: (B, D) @ (D, tk) -> f32 (B, tk).
    # No bias: train-mode BN subtracts the batch mean, so b1 cancels exactly.
    h = jnp.dot(x_ref[...], w1_ref[...], preferred_element_type=jnp.float32)

    # BatchNorm1d, training-mode batch statistics (biased variance), all f32.
    # Exact under hidden tiling: stats are per-feature over the whole batch.
    mean = jnp.mean(h, axis=0, keepdims=True)
    hc = h - mean                                   # reused for var + normalize
    var = jnp.mean(hc * hc, axis=0, keepdims=True)
    scale = gamma_ref[...] * jax.lax.rsqrt(var + BN_EPS)   # gamma folded, (1, tk)
    h = hc * scale + beta_ref[...]

    # ReLU
    h = jnp.maximum(h, 0.0)

    # Linear2 row-block accumulate straight into the resident output:
    # (B, tk) @ (tk, P_pad) added in f32.
    o_ref[...] += jnp.dot(h.astype(w2_ref.dtype), w2_ref[...],
                          preferred_element_type=jnp.float32)


def _vmem_limit_bytes(B, dim, tk, P_pad, w_itemsize, x_itemsize):
    """Computed VMEM budget: actual buffer footprint + headroom, capped for v7x."""
    need = (
        B * dim * x_itemsize            # x (resident)
        + 2 * dim * tk * w_itemsize     # w1 column block (double-buffered)
        + 2 * tk * P_pad * w_itemsize   # w2 row block (double-buffered)
        + 2 * 2 * tk * 4                # gamma / beta tiles (f32, double-buffered)
        + P_pad * 4                     # b2 (resident)
        + B * P_pad * 4                 # resident f32 output accumulator
        + 2 * B * tk * 4                # (B, tk) f32 intermediates (h, hc)
    )
    need = int(need * 1.25) + (2 << 20)             # headroom for compiler temps
    # 56 MiB leaves slack inside v7x's 64 MiB VMEM; v5e/v6e have 128 MiB physical.
    return max(32 << 20, min(need, 56 << 20))


def prepare_mlp_params(w1, b1, gamma, beta, w2, b2, *, block_k=1024,
                       matmul_dtype=jnp.bfloat16):
    """Pad / cast parameters once (hoisted out of the per-call path).

    NOTE: b1 is intentionally ignored -- train-mode BatchNorm cancels any pre-BN
    additive bias exactly, so it does not affect the forward output (intermediate
    activations will not match PyTorch bit-for-bit, the output does).
    For very large batches on v7x prefer block_k <= 512.
    """
    del b1
    assert block_k % 128 == 0, "hidden tile must be a multiple of 128 lanes"
    dim, H = w1.shape
    P = w2.shape[1]

    tk = min(block_k, _round_up(H, 128))
    H_pad = _round_up(H, tk)
    P_pad = _round_up(P, 128)      # lane-dense output store (no vst.msk)

    f32 = jnp.float32
    if H_pad == H:
        w1p = w1
        gp = gamma.reshape(1, H)
        btp = beta.reshape(1, H)
    else:
        # Zero padding keeps padded hidden features exactly inert through
        # BN + ReLU + Linear2 (their w2 rows are zero).
        w1p = jnp.zeros((dim, H_pad), f32).at[:, :H].set(w1)
        gp = jnp.zeros((1, H_pad), f32).at[:, :H].set(gamma)
        btp = jnp.zeros((1, H_pad), f32).at[:, :H].set(beta)

    if H_pad == H and P_pad == P:
        w2p = w2
        b2p = b2.reshape(1, P)
    else:
        w2p = jnp.zeros((H_pad, P_pad), f32).at[:H, :P].set(w2)
        b2p = jnp.zeros((1, P_pad), f32).at[:, :P].set(b2)

    return dict(
        w1=w1p.astype(matmul_dtype),
        gamma=gp.astype(f32),
        beta=btp.astype(f32),
        w2=w2p.astype(matmul_dtype),
        b2=b2p.astype(f32),
        dim=dim, hidden_pad=H_pad, proj=P, proj_pad=P_pad, tk=tk,
        matmul_dtype=matmul_dtype,
    )


def _mlp_pallas_call(B, dim, tk, n_hidden_blocks, P_pad, matmul_dtype,
                     single_buffer_resident):
    # Resident blocks (constant index map) don't need a second pipeline buffer.
    resident = dict(pipeline_mode=pl.Buffered(1)) if single_buffer_resident else {}
    itemsize = jnp.dtype(matmul_dtype).itemsize
    return pl.pallas_call(
        mlp_kernel,
        out_shape=jax.ShapeDtypeStruct((B, P_pad), jnp.float32),
        grid_spec=pltpu.PrefetchScalarGridSpec(
            num_scalar_prefetch=0,
            grid=(n_hidden_blocks,),
            in_specs=[
                pl.BlockSpec((B, dim), lambda k: (0, 0), **resident),   # x resident
                pl.BlockSpec((dim, tk), lambda k: (0, k)),     # w1 column block
                pl.BlockSpec((1, tk), lambda k: (0, k)),       # gamma tile
                pl.BlockSpec((1, tk), lambda k: (0, k)),       # beta tile
                pl.BlockSpec((tk, P_pad), lambda k: (k, 0)),   # w2 row block
                pl.BlockSpec((1, P_pad), lambda k: (0, 0), **resident),  # b2 resident
            ],
            # Output is the resident accumulator (same block every step).
            out_specs=pl.BlockSpec((B, P_pad), lambda k: (0, 0)),
        ),
        compiler_params=pltpu.CompilerParams(
            dimension_semantics=("arbitrary",),   # hidden axis is a reduction
            vmem_limit_bytes=_vmem_limit_bytes(B, dim, tk, P_pad, itemsize, itemsize),
        ),
    )


def mlp_forward(x, params):
    B = x.shape[0]
    dim, tk = params["dim"], params["tk"]
    H_pad, P, P_pad = params["hidden_pad"], params["proj"], params["proj_pad"]
    mdt = params["matmul_dtype"]

    xm = x.astype(mdt)
    args = (xm, params["w1"], params["gamma"], params["beta"],
            params["w2"], params["b2"])
    try:
        out = _mlp_pallas_call(B, dim, tk, H_pad // tk, P_pad, mdt,
                               single_buffer_resident=True)(*args)
    except Exception:
        # pl.Buffered(1) on resident blocks is a pure VMEM optimization; fall back
        # to default double buffering if this jax build does not accept it.
        out = _mlp_pallas_call(B, dim, tk, H_pad // tk, P_pad, mdt,
                               single_buffer_resident=False)(*args)
    return out if P_pad == P else out[:, :P]


def init_params(key, dim, hidden_size, projection_size):
    """Deterministic init mirroring torch.nn.Linear / BatchNorm1d shapes."""
    k1, k2, k3, k4 = jax.random.split(key, 4)
    lim1 = 1.0 / jnp.sqrt(dim)
    lim2 = 1.0 / jnp.sqrt(hidden_size)
    w1 = jax.random.uniform(k1, (dim, hidden_size), jnp.float32, -lim1, lim1)
    b1 = jax.random.uniform(k2, (hidden_size,), jnp.float32, -lim1, lim1)
    w2 = jax.random.uniform(k3, (hidden_size, projection_size), jnp.float32, -lim2, lim2)
    b2 = jax.random.uniform(k4, (projection_size,), jnp.float32, -lim2, lim2)
    gamma = jnp.ones((hidden_size,), jnp.float32)
    beta = jnp.zeros((hidden_size,), jnp.float32)
    return w1, b1, gamma, beta, w2, b2


def mlp_reference(x, w1, b1, gamma, beta, w2, b2, matmul_dtype=jnp.float32):
    """Pure-JAX reference, faithful to the PyTorch module (includes b1)."""
    h = jnp.dot(x.astype(matmul_dtype), w1.astype(matmul_dtype),
                preferred_element_type=jnp.float32) + b1
    mean = jnp.mean(h, axis=0, keepdims=True)
    var = jnp.mean((h - mean) ** 2, axis=0, keepdims=True)
    h = (h - mean) / jnp.sqrt(var + BN_EPS)
    h = h * gamma + beta
    h = jnp.maximum(h, 0.0)
    return jnp.dot(h.astype(matmul_dtype), w2.astype(matmul_dtype),
                   preferred_element_type=jnp.float32) + b2


if __name__ == "__main__":
    # Small shapes consistent with MLP(dim, projection_size, hidden_size).
    # block_k=128 -> grid=(2,) so the hidden-axis accumulation path is exercised.
    B, DIM, HIDDEN, PROJ = 8, 32, 256, 64

    key = jax.random.PRNGKey(0)
    kx, kp = jax.random.split(key)
    x = jax.random.normal(kx, (B, DIM), jnp.float32)
    w1, b1, gamma, beta, w2, b2 = init_params(kp, DIM, HIDDEN, PROJ)

    # f32 debug path: near-exact check vs. the PyTorch-faithful reference
    # (b1 is dropped in the kernel but cancelled by train-mode BN, so outputs match).
    p_f32 = prepare_mlp_params(w1, b1, gamma, beta, w2, b2,
                               block_k=128, matmul_dtype=jnp.float32)
    out_f32 = jax.block_until_ready(mlp_forward(x, p_f32))
    ref_f32 = mlp_reference(x, w1, b1, gamma, beta, w2, b2, jnp.float32)
    assert out_f32.shape == (B, PROJ)
    assert jnp.allclose(out_f32, ref_f32, atol=1e-3, rtol=1e-3), "f32 mismatch vs reference"

    # Default production path: bf16 matmul inputs (native MXU rate on v5e/v6e/v7x),
    # f32 accumulation + f32 BN math; BN stats differ slightly from f32 (intended).
    p_bf16 = prepare_mlp_params(w1, b1, gamma, beta, w2, b2, block_k=128)
    out_bf16 = jax.block_until_ready(mlp_forward(x, p_bf16))
    ref_bf16 = mlp_reference(x, w1, b1, gamma, beta, w2, b2, jnp.bfloat16)
    assert out_bf16.shape == (B, PROJ)
    assert jnp.allclose(out_bf16, ref_bf16, atol=2e-2, rtol=2e-2), "bf16 mismatch vs reference"

    print("KERNEL_OK")
</pallas_src>

<mosaic_0001>
module attributes {stable_mosaic.version = 11 : i64} {
  func.func @mlp_kernel(%arg0: i32, %arg1: memref<8x32xf32, #tpu.memory_space<vmem>>, %arg2: memref<32x128xf32, #tpu.memory_space<vmem>>, %arg3: memref<1x128xf32, #tpu.memory_space<vmem>>, %arg4: memref<1x128xf32, #tpu.memory_space<vmem>>, %arg5: memref<128x128xf32, #tpu.memory_space<vmem>>, %arg6: memref<1x128xf32, #tpu.memory_space<vmem>>, %arg7: memref<8x128xf32, #tpu.memory_space<vmem>>) attributes {dimension_semantics = [#tpu.dimension_semantics<arbitrary>], iteration_bounds = array<i64: 2>, scalar_prefetch = 0 : i64, scratch_operands = 0 : i64, tpu.core_type = #tpu.core_type<tc>, window_params = [{pipeline_mode = #tpu.pipeline_mode<synchronous>, transform_indices = @transform_0, window_bounds = array<i64: 8, 32>}, {transform_indices = @transform_1, window_bounds = array<i64: 32, 128>}, {transform_indices = @transform_2, window_bounds = array<i64: 1, 128>}, {transform_indices = @transform_3, window_bounds = array<i64: 1, 128>}, {transform_indices = @transform_4, window_bounds = array<i64: 128, 128>}, {pipeline_mode = #tpu.pipeline_mode<synchronous>, transform_indices = @transform_5, window_bounds = array<i64: 1, 128>}, {pipeline_mode = #tpu.pipeline_mode<synchronous>, transform_indices = @transform_6, window_bounds = array<i64: 8, 128>}]} {
    %c0_i32 = arith.constant 0 : i32
    %0 = arith.cmpi eq, %arg0, %c0_i32 : i32
    %1 = arith.extui %0 : i1 to i32
    %c0_i32_0 = arith.constant 0 : i32
    %2 = arith.cmpi ne, %1, %c0_i32_0 : i32
    scf.if %2 {
      %c0_21 = arith.constant 0 : index
      %c0_22 = arith.constant 0 : index
      %34 = vector.load %arg6[%c0_21, %c0_22] : memref<1x128xf32, #tpu.memory_space<vmem>>, vector<1x128xf32>
      %35 = vector.shape_cast %34 : vector<1x128xf32> to vector<1x128xf32>
      %36 = vector.broadcast %35 : vector<1x128xf32> to vector<8x128xf32>
      %c0_23 = arith.constant 0 : index
      %c0_24 = arith.constant 0 : index
      %37 = vector.load %arg7[%c0_23, %c0_24] : memref<8x128xf32, #tpu.memory_space<vmem>>, vector<8x128xf32>
      tpu.vector_store %arg7[%c0_23, %c0_24], %36 {strides = array<i32>} : memref<8x128xf32, #tpu.memory_space<vmem>>, vector<8x128xf32>,
    } else {
    }
    %c0 = arith.constant 0 : index
    %c0_1 = arith.constant 0 : index
    %3 = vector.load %arg1[%c0, %c0_1] : memref<8x32xf32, #tpu.memory_space<vmem>>, vector<8x32xf32>
    %c0_2 = arith.constant 0 : index
    %c0_3 = arith.constant 0 : index
    %4 = vector.load %arg2[%c0_2, %c0_3] : memref<32x128xf32, #tpu.memory_space<vmem>>, vector<32x128xf32>
    %cst = arith.constant dense<0.000000e+00> : vector<8x128xf32>
    %5 = tpu.matmul %3, %4, %cst {dimension_numbers = #tpu.dot_dimension_numbers<[1], [0], [0], [1], [0, 0, 1, 1], [], []>} : vector<8x32xf32>, vector<32x128xf32>, vector<8x128xf32> -> vector<8x128xf32>
    %cst_4 = arith.constant dense<0.000000e+00> : vector<128xf32>
    %6 = vector.multi_reduction <add>, %5, %cst_4 [0] : vector<8x128xf32> to vector<128xf32>
    %7 = vector.shape_cast %6 : vector<128xf32> to vector<1x128xf32>
    %cst_5 = arith.constant 8.000000e+00 : f32
    %8 = vector.broadcast %cst_5 : f32 to vector<1x128xf32>
    %9 = arith.divf %7, %8 : vector<1x128xf32>
    %10 = vector.broadcast %9 : vector<1x128xf32> to vector<8x128xf32>
    %11 = arith.subf %5, %10 : vector<8x128xf32>
    %12 = arith.mulf %11, %11 : vector<8x128xf32>
    %cst_6 = arith.constant dense<0.000000e+00> : vector<128xf32>
    %13 = vector.multi_reduction <add>, %12, %cst_6 [0] : vector<8x128xf32> to vector<128xf32>
    %14 = vector.shape_cast %13 : vector<128xf32> to vector<1x128xf32>
    %cst_7 = arith.constant 8.000000e+00 : f32
    %15 = vector.broadcast %cst_7 : f32 to vector<1x128xf32>
    %16 = arith.divf %14, %15 : vector<1x128xf32>
    %c0_8 = arith.constant 0 : index
    %c0_9 = arith.constant 0 : index
    %17 = vector.load %arg3[%c0_8, %c0_9] : memref<1x128xf32, #tpu.memory_space<vmem>>, vector<1x128xf32>
    %cst_10 = arith.constant 9.99999974E-6 : f32
    %18 = vector.broadcast %cst_10 : f32 to vector<1x128xf32>
    %19 = arith.addf %16, %18 : vector<1x128xf32>
    %20 = math.rsqrt %19 : vector<1x128xf32>
    %21 = arith.mulf %17, %20 : vector<1x128xf32>
    %22 = vector.broadcast %21 : vector<1x128xf32> to vector<8x128xf32>
    %23 = arith.mulf %11, %22 : vector<8x128xf32>
    %c0_11 = arith.constant 0 : index
    %c0_12 = arith.constant 0 : index
    %24 = vector.load %arg4[%c0_11, %c0_12] : memref<1x128xf32, #tpu.memory_space<vmem>>, vector<1x128xf32>
    %25 = vector.broadcast %24 : vector<1x128xf32> to vector<8x128xf32>
    %26 = arith.addf %23, %25 : vector<8x128xf32>
    %cst_13 = arith.constant 0.000000e+00 : f32
    %27 = vector.broadcast %cst_13 : f32 to vector<8x128xf32>
    %28 = arith.maximumf %26, %27 : vector<8x128xf32>
    %c0_14 = arith.constant 0 : index
    %c0_15 = arith.constant 0 : index
    %29 = vector.load %arg7[%c0_14, %c0_15] : memref<8x128xf32, #tpu.memory_space<vmem>>, vector<8x128xf32>
    %c0_16 = arith.constant 0 : index
    %c0_17 = arith.constant 0 : index
    %30 = vector.load %arg5[%c0_16, %c0_17] : memref<128x128xf32, #tpu.memory_space<vmem>>, vector<128x128xf32>
    %cst_18 = arith.constant dense<0.000000e+00> : vector<8x128xf32>
    %31 = tpu.matmul %28, %30, %cst_18 {dimension_numbers = #tpu.dot_dimension_numbers<[1], [0], [0], [1], [0, 0, 1, 1], [], []>} : vector<8x128xf32>, vector<128x128xf32>, vector<8x128xf32> -> vector<8x128xf32>
    %32 = arith.addf %29, %31 : vector<8x128xf32>
    %c0_19 = arith.constant 0 : index
    %c0_20 = arith.constant 0 : index
    %33 = vector.load %arg7[%c0_19, %c0_20] : memref<8x128xf32, #tpu.memory_space<vmem>>, vector<8x128xf32>
    tpu.vector_store %arg7[%c0_19, %c0_20], %32 {strides = array<i32>} : memref<8x128xf32, #tpu.memory_space<vmem>>, vector<8x128xf32>,
    return
  }
  func.func @transform_0(%arg0: i32) -> (i32, i32) {
    %c0_i32 = arith.constant 0 : i32
    %c0_i32_0 = arith.constant 0 : i32
    %c0_i32_1 = arith.constant 0 : i32
    return %c0_i32, %c0_i32_0 : i32, i32
  }
  func.func @transform_1(%arg0: i32) -> (i32, i32) {
    %c0_i32 = arith.constant 0 : i32
    %c0_i32_0 = arith.constant 0 : i32
    return %c0_i32, %arg0 : i32, i32
  }
  func.func @transform_2(%arg0: i32) -> (i32, i32) {
    %c0_i32 = arith.constant 0 : i32
    %c0_i32_0 = arith.constant 0 : i32
    return %c0_i32, %arg0 : i32, i32
  }
  func.func @transform_3(%arg0: i32) -> (i32, i32) {
    %c0_i32 = arith.constant 0 : i32
    %c0_i32_0 = arith.constant 0 : i32
    return %c0_i32, %arg0 : i32, i32
  }
  func.func @transform_4(%arg0: i32) -> (i32, i32) {
    %c0_i32 = arith.constant 0 : i32
    %c0_i32_0 = arith.constant 0 : i32
    return %arg0, %c0_i32 : i32, i32
  }
  func.func @transform_5(%arg0: i32) -> (i32, i32) {
    %c0_i32 = arith.constant 0 : i32
    %c0_i32_0 = arith.constant 0 : i32
    %c0_i32_1 = arith.constant 0 : i32
    return %c0_i32, %c0_i32_0 : i32, i32
  }
  func.func @transform_6(%arg0: i32) -> (i32, i32) {
    %c0_i32 = arith.constant 0 : i32
    %c0_i32_0 = arith.constant 0 : i32
    %c0_i32_1 = arith.constant 0 : i32
    return %c0_i32, %c0_i32_0 : i32, i32
  }
}

module attributes {stable_mosaic.version = 11 : i64} {
  func.func @mlp_kernel(%arg0: i32, %arg1: memref<8x32xf32, #tpu.memory_space<vmem>>, %arg2: memref<32x128xf32, #tpu.memory_space<vmem>>, %arg3: memref<1x128xf32, #tpu.memory_space<vmem>>, %arg4: memref<1x128xf32, #tpu.memory_space<vmem>>, %arg5: memref<128x128xf32, #tpu.memory_space<vmem>>, %arg6: memref<1x128xf32, #tpu.memory_space<vmem>>, %arg7: memref<8x128xf32, #tpu.memory_space<vmem>>) attributes {dimension_semantics = [#tpu.dimension_semantics<arbitrary>], iteration_bounds = array<i64: 2>, scalar_prefetch = 0 : i64, scratch_operands = 0 : i64, tpu.core_type = #tpu.core_type<tc>, window_params = [{pipeline_mode = #tpu.pipeline_mode<synchronous>, transform_indices = @transform_0, window_bounds = array<i64: 8, 32>}, {transform_indices = @transform_1, window_bounds = array<i64: 32, 128>}, {transform_indices = @transform_2, window_bounds = array<i64: 1, 128>}, {transform_indices = @transform_3, window_bounds = array<i64: 1, 128>}, {transform_indices = @transform_4, window_bounds = array<i64: 128, 128>}, {pipeline_mode = #tpu.pipeline_mode<synchronous>, transform_indices = @transform_5, window_bounds = array<i64: 1, 128>}, {pipeline_mode = #tpu.pipeline_mode<synchronous>, transform_indices = @transform_6, window_bounds = array<i64: 8, 128>}]} {
    %c0_i32 = arith.constant 0 : i32
    %0 = arith.cmpi eq, %arg0, %c0_i32 : i32
    %1 = arith.extui %0 : i1 to i32
    %c0_i32_0 = arith.constant 0 : i32
    %2 = arith.cmpi ne, %1, %c0_i32_0 : i32
    scf.if %2 {
      %c0_21 = arith.constant 0 : index
      %c0_22 = arith.constant 0 : index
      %34 = vector.load %arg6[%c0_21, %c0_22] : memref<1x128xf32, #tpu.memory_space<vmem>>, vector<1x128xf32>
      %35 = vector.shape_cast %34 : vector<1x128xf32> to vector<1x128xf32>
      %36 = vector.broadcast %35 : vector<1x128xf32> to vector<8x128xf32>
      %c0_23 = arith.constant 0 : index
      %c0_24 = arith.constant 0 : index
      %37 = vector.load %arg7[%c0_23, %c0_24] : memref<8x128xf32, #tpu.memory_space<vmem>>, vector<8x128xf32>
      tpu.vector_store %arg7[%c0_23, %c0_24], %36 {strides = array<i32>} : memref<8x128xf32, #tpu.memory_space<vmem>>, vector<8x128xf32>,
    } else {
    }
    %c0 = arith.constant 0 : index
    %c0_1 = arith.constant 0 : index
    %3 = vector.load %arg1[%c0, %c0_1] : memref<8x32xf32, #tpu.memory_space<vmem>>, vector<8x32xf32>
    %c0_2 = arith.constant 0 : index
    %c0_3 = arith.constant 0 : index
    %4 = vector.load %arg2[%c0_2, %c0_3] : memref<32x128xf32, #tpu.memory_space<vmem>>, vector<32x128xf32>
    %cst = arith.constant dense<0.000000e+00> : vector<8x128xf32>
    %5 = tpu.matmul %3, %4, %cst {dimension_numbers = #tpu.dot_dimension_numbers<[1], [0], [0], [1], [0, 0, 1, 1], [], []>} : vector<8x32xf32>, vector<32x128xf32>, vector<8x128xf32> -> vector<8x128xf32>
    %cst_4 = arith.constant dense<0.000000e+00> : vector<128xf32>
    %6 = vector.multi_reduction <add>, %5, %cst_4 [0] : vector<8x128xf32> to vector<128xf32>
    %7 = vector.shape_cast %6 : vector<128xf32> to vector<1x128xf32>
    %cst_5 = arith.constant 8.000000e+00 : f32
    %8 = vector.broadcast %cst_5 : f32 to vector<1x128xf32>
    %9 = arith.divf %7, %8 : vector<1x128xf32>
    %10 = vector.broadcast %9 : vector<1x128xf32> to vector<8x128xf32>
    %11 = arith.subf %5, %10 : vector<8x128xf32>
    %12 = arith.mulf %11, %11 : vector<8x128xf32>
    %cst_6 = arith.constant dense<0.000000e+00> : vector<128xf32>
    %13 = vector.multi_reduction <add>, %12, %cst_6 [0] : vector<8x128xf32> to vector<128xf32>
    %14 = vector.shape_cast %13 : vector<128xf32> to vector<1x128xf32>
    %cst_7 = arith.constant 8.000000e+00 : f32
    %15 = vector.broadcast %cst_7 : f32 to vector<1x128xf32>
    %16 = arith.divf %14, %15 : vector<1x128xf32>
    %c0_8 = arith.constant 0 : index
    %c0_9 = arith.constant 0 : index
    %17 = vector.load %arg3[%c0_8, %c0_9] : memref<1x128xf32, #tpu.memory_space<vmem>>, vector<1x128xf32>
    %cst_10 = arith.constant 9.99999974E-6 : f32
    %18 = vector.broadcast %cst_10 : f32 to vector<1x128xf32>
    %19 = arith.addf %16, %18 : vector<1x128xf32>
    %20 = math.rsqrt %19 : vector<1x128xf32>
    %21 = arith.mulf %17, %20 : vector<1x128xf32>
    %22 = vector.broadcast %21 : vector<1x128xf32> to vector<8x128xf32>
    %23 = arith.mulf %11, %22 : vector<8x128xf32>
    %c0_11 = arith.constant 0 : index
    %c0_12 = arith.constant 0 : index
    %24 = vector.load %arg4[%c0_11, %c0_12] : memref<1x128xf32, #tpu.memory_space<vmem>>, vector<1x128xf32>
    %25 = vector.broadcast %24 : vector<1x128xf32> to vector<8x128xf32>
    %26 = arith.addf %23, %25 : vector<8x128xf32>
    %cst_13 = arith.constant 0.000000e+00 : f32
    %27 = vector.broadcast %cst_13 : f32 to vector<8x128xf32>
    %28 = arith.maximumf %26, %27 : vector<8x128xf32>
    %c0_14 = arith.constant 0 : index
    %c0_15 = arith.constant 0 : index
    %29 = vector.load %arg7[%c0_14, %c0_15] : memref<8x128xf32, #tpu.memory_space<vmem>>, vector<8x128xf32>
    %c0_16 = arith.constant 0 : index
    %c0_17 = arith.constant 0 : index
    %30 = vector.load %arg5[%c0_16, %c0_17] : memref<128x128xf32, #tpu.memory_space<vmem>>, vector<128x128xf32>
    %cst_18 = arith.constant dense<0.000000e+00> : vector<8x128xf32>
    %31 = tpu.matmul %28, %30, %cst_18 {dimension_numbers = #tpu.dot_dimension_numbers<[1], [0], [0], [1], [0, 0, 1, 1], [], []>} : vector<8x128xf32>, vector<128x128xf32>, vector<8x128xf32> -> vector<8x128xf32>
    %32 = arith.addf %29, %31 : vector<8x128xf32>
    %c0_19 = arith.constant 0 : index
    %c0_20 = arith.constant 0 : index
    %33 = vector.load %arg7[%c0_19, %c0_20] : memref<8x128xf32, #tpu.memory_space<vmem>>, vector<8x128xf32>
    tpu.vector_store %arg7[%c0_19, %c0_20], %32 {strides = array<i32>} : memref<8x128xf32, #tpu.memory_space<vmem>>, vector<8x128xf32>,
    return
  }
  func.func @transform_0(%arg0: i32) -> (i32, i32) {
    %c0_i32 = arith.constant 0 : i32
    %c0_i32_0 = arith.constant 0 : i32
    %c0_i32_1 = arith.constant 0 : i32
    return %c0_i32, %c0_i32_0 : i32, i32
  }
  func.func @transform_1(%arg0: i32) -> (i32, i32) {
    %c0_i32 = arith.constant 0 : i32
    %c0_i32_0 = arith.constant 0 : i32
    return %c0_i32, %arg0 : i32, i32
  }
  func.func @transform_2(%arg0: i32) -> (i32, i32) {
    %c0_i32 = arith.constant 0 : i32
    %c0_i32_0 = arith.constant 0 : i32
    return %c0_i32, %arg0 : i32, i32
  }
  func.func @transform_3(%arg0: i32) -> (i32, i32) {
    %c0_i32 = arith.constant 0 : i32
    %c0_i32_0 = arith.constant 0 : i32
    return %c0_i32, %arg0 : i32, i32
  }
  func.func @transform_4(%arg0: i32) -> (i32, i32) {
    %c0_i32 = arith.constant 0 : i32
    %c0_i32_0 = arith.constant 0 : i32
    return %arg0, %c0_i32 : i32, i32
  }
  func.func @transform_5(%arg0: i32) -> (i32, i32) {
    %c0_i32 = arith.constant 0 : i32
    %c0_i32_0 = arith.constant 0 : i32
    %c0_i32_1 = arith.constant 0 : i32
    return %c0_i32, %c0_i32_0 : i32, i32
  }
  func.func @transform_6(%arg0: i32) -> (i32, i32) {
    %c0_i32 = arith.constant 0 : i32
    %c0_i32_0 = arith.constant 0 : i32
    %c0_i32_1 = arith.constant 0 : i32
    return %c0_i32, %c0_i32_0 : i32, i32
  }
}

</mosaic_0001>

<bundles_post_ra>
// kernel: tpu_custom_call.1
= control target key start
LH: loop header
LB: loop body
LE: loop exit
PB: predicated region body
PF: predicated region fallthrough
CT: control target
= control target key end

     0   :  { %11 = vsyncpa [#allocation3], 0  ;;  %s1265_s0 = inlined_call_operand.hbm [shape: f32[8,32], index: 0, kind: input, shape index: {}]   ;;  %s1266_s1 = inlined_call_operand.hbm [shape: f32[32,256], index: 1, kind: input, shape index: {}]   ;;  %s1267_s2 = inlined_call_operand.vmem [shape: f32[1,256], index: 2, kind: input, shape index: {}]   ;;  %s1268_s3 = inlined_call_operand.vmem [shape: f32[1,256], index: 3, kind: input, shape index: {}]   ;;  %s1269_s4 = inlined_call_operand.hbm [shape: f32[256,128], index: 4, kind: input, shape index: {}]   ;;  %s1270_s5 = inlined_call_operand.vmem [shape: f32[1,128], index: 5, kind: input, shape index: {}]   ;;  %s1271_s6 = inlined_call_operand.hbm [shape: f32[8,128], index: 6, kind: output, shape index: {}]  }
   0x1   :  { %12 = vsyncpa [#allocation6], 0 }
   0x2   :  { %14 = vsyncpa [#allocation6 + $0x1], 0 }
   0x3   :  { %15 = vsyncpa [#allocation4], 0  ;;  %s1013_s21 = smov 0   ;;  %s1015_s22 = smov 0  }
   0x4   :  { %s1017_s23 = smov 0   ;;  %s1019_s24 = smov 0  }
   0x5 LB: > { %s1034_s25 = sadd.s32 1, %s967_s24   ;;  %s49_s26 = sadd.s32 1, %s963_s23  ;;  %s967_s24 = sphi %s1019_s24, %s1285_s24   ;;  %s963_s23 = sphi %s1017_s23, %s1284_s23   ;;  %s959_s22 = sphi %s1015_s22, %s1283_s22   ;;  %s955_s21 = sphi %s1013_s21, %s1282_s21  }
   0x6   : > { %s46_s27 = ssub.s32 %s967_s24, %s1034_s25  ;;  %p56_p0 = scmp.ne.s32.totalorder %s963_s23, %s959_s22 }
   0x7   : > { %p47_p1 = scmp.eq.s32.totalorder %s46_s27, 0  ;;  %p57_p2 = scmp.eq.s32.totalorder %s967_s24, 0 }
   0x8   : > { %p774_p3 = scmp.lt.s32.totalorder %s967_s24, 2  ;;  %s220_s29 = sand.u32 1, %s967_s24  }
   0x9   : > { %s1044_s28 = scalar_select %p47_p1, %s963_s23, %s49_s26  }
   0xa   : > { %p58_p4 = por %p57_p2, %p56_p0  ;;  %s222_s30 = sand.u32 1, %s963_s23  }
   0xb   : > { %s664_s7 = sshll.u32 %s222_s30, 5  ;;  %s665_s8 = sshll.u32 %s967_s24, 7 }
   0xc   : > { %s1054_s11 = scalar_lea.hbm %s1266_s1, %s665_s8  ;;  %s224_s12 = scalar_lea.vmem [#allocation5], %s664_s7 }
   0xd   : > { %s230_s13 = sshll.u32 %s224_s12, 4  ;;  %p1056_p5 = pnand %p774_p3, %p58_p4  ;;  %s1060_s13 = int_to_ptr.vmem [resolvable:$true] %s230_s13 }
   0xe   : > { %s1062_s15 = scalar_lea.sflag [#allocation6], %s220_s29  ;;  %s819_s16 = scalar_lea.hbm %s1054_s11, 512 }
   0xf   : > { %p820_p6 = scmp.ne.s32.totalorder %s1054_s11, %s819_s16  ;;  %p821_p7 = pneg %p1056_p5 }
  0x10   : > { %s824_s19 = scalar_lea.hbm %s1266_s1, 1024  ;;  %p825_p10 = scmp.lt.s32.totalorder %s1054_s11, %s1266_s1 }
  0x11   : > { %p822_p8 = pnand %p821_p7, %p820_p6  ;;  %p826_p11 = scmp.lt.s32.totalorder %s824_s19, %s819_s16 }
  0x13   : > { %p823_p9 = pneg %p822_p8  ;;  %p827_p12 = por %p826_p11, %p825_p10 }
  0x15   : > { %p828_p13 = pnand %p827_p12, %p823_p9 }
  0x17   : > { %831 = shalt.err (!%p828_p13)
}
  0x18   : > { %s832_s27 = scalar_lea.vmem %s1060_s13, 512  ;;  %s969_s29 = smov [#allocation5]  }
  0x19   : > { %p833_p0 = scmp.ne.s32.totalorder %s1060_s13, %s832_s27  ;;  %s837_s7 = sshll.u32 %s969_s29, 4  ;;  %s838_s7 = int_to_ptr.vmem [resolvable:$false] %s837_s7 }
  0x1a   : > { %s839_s8 = scalar_lea.vmem %s838_s7, 1024  ;;  %p840_p3 = scmp.lt.s32.totalorder %s1060_s13, %s838_s7 }
  0x1b   : > { %p835_p1 = pnand %p833_p0, %p821_p7  ;;  %p841_p4 = scmp.lt.s32.totalorder %s839_s8, %s832_s27 }
  0x1d   : > { %p836_p2 = pneg %p835_p1  ;;  %p842_p6 = por %p841_p4, %p840_p3 }
  0x1f   : > { %p843_p8 = pnand %p842_p6, %p836_p2 }
  0x21   : > { %846 = shalt.err (!%p843_p8)
}
  0x22   : > { %s970_s9 = smov 256   ;;  %s971_s10 = smov 128  }
  0x23   : > { %s972_s12 = smov 8   ;;  %s1092_s16 = sadd.s32 4294967295, %s967_s24  }
  0x24   : > { %769 = dma.hbm_to_vmem [thread:$0]  (!%p1056_p5), %s1054_s11, 512, %s1060_s13, %s1062_s15, %s970_s9, %s971_s10, %s972_s12  }
  0x25   : > { %p62_p9 = scmp.ne.s32.totalorder %s959_s22, %s955_s21  ;;  %p1272_p10 = scmp.eq.s32.totalorder %s1092_s16, 0 }
  0x26   : > { %p661_p11 = scmp.ge.s32.totalorder %s967_s24, 1  ;;  %p193_p12 = scmp.lt.s32.totalorder %s967_s24, 3 }
  0x27   : > { %p1101_p13 = por %p1272_p10, %p62_p9  ;;  %s973_s11 = smov [#allocation2]  }
  0x28   : > { %p1106_p1 = pnand %p661_p11, %p193_p12  ;;  %s206_s13 = sshll.u32 %s973_s11, 4  ;;  %s207_s13 = int_to_ptr.vmem [resolvable:$true] %s206_s13 }
  0x29   : > { %s1275_s17 = scalar_select %p1101_p13, 1, 0 }
  0x2a   : > { %s666_s19 = sshll.u32 %s222_s30, 7  ;;  %p762_p2 = pneg %p1106_p1 }
  0x2b   : > { %s681_s21 = sshll.u32 %s967_s24, 11  ;;  %s256_s7 = scalar_lea.vmem [#allocation7], %s666_s19 }
  0x2c   : > { %p1117_p3 = pnand %p762_p2, %p1272_p10  ;;  %s1124_s29 = scalar_lea.hbm %s1269_s4, %s681_s21 }
  0x2d   : > { %s263_s8 = sshll.u32 %s256_s7, 4  ;;  %s858_s30 = scalar_lea.vmem %s207_s13, 128  ;;  %s1126_s8 = int_to_ptr.vmem [resolvable:$true] %s263_s8 }
  0x2e   : > { %p849_p4 = pneg %p1117_p3  ;;  %p859_p6 = scmp.ne.s32.totalorder %s207_s13, %s858_s30 }
  0x2f   : > { %p866_p11 = scmp.lt.s32.totalorder %s207_s13, %s207_s13  ;;  %p867_p12 = scmp.lt.s32.totalorder %s858_s30, %s858_s30 }
  0x30   : > { %p861_p8 = pnand %p859_p6, %p849_p4 }
  0x31   : > { %p868_p2 = por %p867_p12, %p866_p11 }
  0x32   : > { %p862_p9 = pneg %p861_p8 }
  0x34   : > { %p869_p0 = pnand %p868_p2, %p862_p9 }
  0x36   : > { %872 = shalt.err (!%p869_p0)
}
  0x37   : > { %765 = dma.hbm_to_vmem [thread:$0]  (!%p1117_p3), %s1265_s0, 128, %s207_s13, [#allocation3]  }
  0x38   : > { %s873_s11 = scalar_lea.hbm %s1124_s29, 2048  ;;  %s878_s26 = scalar_lea.hbm %s1269_s4, 4096 }
  0x39   : > { %p874_p10 = scmp.ne.s32.totalorder %s1124_s29, %s873_s11  ;;  %p879_p0 = scmp.lt.s32.totalorder %s1124_s29, %s1269_s4 }
  0x3a   : > { %p880_p8 = scmp.lt.s32.totalorder %s878_s26, %s873_s11 }
  0x3b   : > { %p876_p4 = pnand %p874_p10, %p821_p7 }
  0x3c   : > { %p881_p9 = por %p880_p8, %p879_p0 }
  0x3d   : > { %p877_p6 = pneg %p876_p4 }
  0x3f   : > { %p882_p11 = pnand %p881_p9, %p877_p6 }
  0x41   : > { %885 = shalt.err (!%p882_p11)
}
  0x42   : > { %s886_s13 = scalar_lea.vmem %s1126_s8, 2048  ;;  %s974_s7 = smov [#allocation7]  }
  0x43   : > { %p887_p3 = scmp.ne.s32.totalorder %s1126_s8, %s886_s13  ;;  %s891_s30 = sshll.u32 %s974_s7, 4  ;;  %s892_s30 = int_to_ptr.vmem [resolvable:$false] %s891_s30 }
  0x44   : > { %s893_s24 = scalar_lea.vmem %s892_s30, 4096  ;;  %p894_p2 = scmp.lt.s32.totalorder %s1126_s8, %s892_s30 }
  0x45   : > { %p889_p10 = pnand %p887_p3, %p821_p7  ;;  %p895_p4 = scmp.lt.s32.totalorder %s893_s24, %s886_s13 }
  0x47   : > { %p890_p12 = pneg %p889_p10  ;;  %p896_p13 = por %p895_p4, %p894_p2 }
  0x49   : > { %p897_p0 = pnand %p896_p13, %p890_p12 }
  0x4b   : > { %900 = shalt.err (!%p897_p0)
}
  0x4c   : > { %772 = dma.hbm_to_vmem [thread:$0]  (!%p1056_p5), %s1124_s29, 2048, %s1126_s8, %s1062_s15, %s971_s10, %s971_s10, %s972_s12  }
  0x4d   : > { %275 = sbr.rel (%p1106_p1) target bundleno = 558 (0x22e), region = 44  ;;  %p1278_p7 = scmp.eq.s32.totalorder (!%p1106_p1), %s1092_s16, 0 }
  0x52   : > { %942 = dma.done.wait (%p1278_p7), [#allocation3], 128   ;;  %p1279_p6 = pmov %p1278_p7 }
  0x53   : > { %s281_s14 = sand.u32 1, %s1092_s16   ;;  %s283_s9 = sand.u32 1, %s959_s22  }
  0x54   : > { %944 = vsyncadd (%p1279_p6), [#allocation3], 4294967168  ;;  %s671_s11 = sshll.u32 %s283_s9, 5  ;;  %s282_s19 = scalar_lea.sflag [#allocation6], %s281_s14 }
  0x55   : > { %s285_s21 = scalar_lea.vmem [#allocation5], %s671_s11  ;;  %p1280_p13 = scmp.ne.s32.totalorder %s1275_s17, 0 }
  0x57   : > { %946 = dma.done.wait (%p1280_p13), %s282_s19, 2560  }
  0x58   : > { %948 = vsyncadd (%p1280_p13), %s282_s19, 4294964736  ;;  %s672_s15 = sshll.u32 %s283_s9, 7  ;;  %p329_p5 = scmp.lt.s32.totalorder %s1092_s16, 1 }
  0x59   : > { %s1185_s20 = scalar_lea.vmem [#allocation7], %s672_s15  ;;  %p1281_p1 = scmp.ne.s32.totalorder %s1092_s16, 0 }
  0x5a   : > { %s1175_s10 = scalar_select %p329_p5, %s1092_s16, 1 }
  0x5b   : > { %339 = sbr.rel (%p1281_p1) target bundleno = 98 (0x62), region = 60 }
  0x5c   : > { %s331_s29 = scalar_lea.vmem %s1267_s2, %s1175_s10  ;;  %s334_s27 = scalar_lea.vmem %s1268_s3, %s1175_s10 }
  0x60   : > { %v674_v0 = vld [vmem:[%s1270_s5] ss:$0 sm:$0xff] }
  0x61   : > { %347 = vst [vmem:[#allocation8] sm:$0xff] %v674_v0 }
  0x62 PF: > { %v352_v1 = vld [vmem:[%s285_s21 + $0x18] sm:$0xff]  ;;  %v975_v2 = vmov 0.0   ;;  %v351_v3 = vld [vmem:[%s285_s21 + $0x10] sm:$0xff]  ;;  %vm976_vm0 = vmmov 0   ;;  %v350_v4 = vld [vmem:[%s285_s21 + $0x8] sm:$0xff]  ;;  %vm353_vm1 = vcmask 261120   ;;  %v449_v42 = vlaneseq }
  0x63   : > { %704 = vmatprep.subr.mxu0 %v975_v2  ;;  %712 = vmatprep.mubr.msk.f32.mxu0 %vm976_vm0, %v975_v2  ;;  %v349_v5 = vld [vmem:[%s285_s21] sm:$0xff]  ;;  %v348_v6 = vld [vmem:[#allocation2] sm:$0xff]  ;;  %v479_v8 = vld [vmem:[%s1185_s20 + $0x70] sm:$0xff]  ;;  %s977_s9 = smov [#allocation8]   ;;  %p776_p8 = scmp.eq.s32.totalorder %s1092_s16, 1 }
  0x64   : > { %705 = vmatpush3.msra.mxu0 %v352_v1  ;;  %715 = vmatprep.subr.mxu1 %v975_v2  ;;  %v480_v7 = vld [vmem:[%s1185_s20 + $0x78] sm:$0xff]  ;;  %v478_v9 = vld [vmem:[%s1185_s20 + $0x68] sm:$0xff]  ;;  %v477_v10 = vld [vmem:[%s1185_s20 + $0x60] sm:$0xff]  ;;  %v450_v43 = vshrl.u32 %v449_v42, 7  ;;  %s560_s11 = sshll.u32 %s977_s9, 4  ;;  %s561_s11 = int_to_ptr.vmem [resolvable:$true] %s560_s11 }
  0x65   : > { %706 = vmatprep.subr.mxu0 %v975_v2  ;;  %747 = vmatprep.mubr.msk.f32.mxu1 %vm976_vm0, %v975_v2  ;;  %v476_v11 = vld [vmem:[%s1185_s20 + $0x58] sm:$0xff]  ;;  %v475_v12 = vld [vmem:[%s1185_s20 + $0x50] sm:$0xff]  ;;  %v474_v13 = vld [vmem:[%s1185_s20 + $0x48] sm:$0xff]  ;;  %s901_s19 = scalar_lea.vmem %s561_s11, 128  ;;  %p908_p10 = scmp.lt.s32.totalorder %s561_s11, %s561_s11 }
  0x66   : > { %707 = vmatpush3.msra.mxu0 %v351_v3  ;;  %716 = vmatpush3.msra.mxu1 %v480_v7  ;;  %v473_v14 = vld [vmem:[%s1185_s20 + $0x40] sm:$0xff]  ;;  %v472_v15 = vld [vmem:[%s1185_s20 + $0x38] sm:$0xff]  ;;  %v471_v16 = vld [vmem:[%s1185_s20 + $0x30] sm:$0xff]  ;;  %v451_v45 = vsub.s32 0, %v450_v43  ;;  %p902_p9 = scmp.ne.s32.totalorder %s561_s11, %s901_s19  ;;  %p909_p12 = scmp.lt.s32.totalorder %s901_s19, %s901_s19 }
  0x67   : > { %708 = vmatprep.subr.mxu0 %v975_v2  ;;  %717 = vmatprep.subr.mxu1 %v975_v2  ;;  %v470_v17 = vld [vmem:[%s1185_s20 + $0x28] sm:$0xff]  ;;  %v469_v18 = vld [vmem:[%s1185_s20 + $0x20] sm:$0xff]  ;;  %v468_v19 = vld [vmem:[%s1185_s20 + $0x18] sm:$0xff] }
  0x68   : > { %709 = vmatpush3.msra.mxu0 %v350_v4  ;;  %718 = vmatpush3.msra.mxu1 %v479_v8  ;;  %v467_v20 = vld [vmem:[%s1185_s20 + $0x10] sm:$0xff]  ;;  %v466_v21 = vld [vmem:[%s1185_s20 + $0x8] sm:$0xff]  ;;  %v465_v22 = vld [vmem:[%s1185_s20] sm:$0xff]  ;;  %p903_p11 = pnand %p902_p9, %p776_p8  ;;  %p910_p2 = por %p909_p12, %p908_p10 }
  0x69   : > { %710 = vmatprep.subr.mxu0 %v975_v2  ;;  %719 = vmatprep.subr.mxu1 %v975_v2  ;;  %v444_v44 = vld [vmem:[%s331_s29] sm:$0x1]  ;;  %v464_v53 = vld [vmem:[#allocation8] sm:$0xff] }
  0x6a   : > { %711 = vmatpush3.msra.mxu0 %v349_v5  ;;  %720 = vmatpush3.msra.mxu1 %v478_v9  ;;  %v676_v49 = vld [vmem:[%s334_s27] ss:$0 sm:$0xff]  ;;  %p904_p3 = pneg %p903_p11 }
  0x6b   : > { %713 = vmatmul.mubr.msk.f32.vlgmr.msra.gmra.mxu0 %vm353_vm1, %v348_v6  ;;  %721 = vmatprep.subr.mxu1 %v975_v2 }
  0x6c   : > { %722 = vmatpush3.msra.mxu1 %v477_v10  ;;  %p911_p4 = pnand %p910_p2, %p904_p3 }
  0x6d   : > { %723 = vmatprep.subr.mxu1 %v975_v2 }
  0x6e   : > { %724 = vmatpush3.msra.mxu1 %v476_v11 }
  0x6f   : > { %725 = vmatprep.subr.mxu1 %v975_v2 }
  0x70   : > { %726 = vmatpush3.msra.mxu1 %v475_v12 }
  0x71   : > { %727 = vmatprep.subr.mxu1 %v975_v2 }
  0x72   : > { %728 = vmatpush3.msra.mxu1 %v474_v13 }
  0x73   : > { %729 = vmatprep.subr.mxu1 %v975_v2 }
  0x74   : > { %730 = vmatpush3.msra.mxu1 %v473_v14 }
  0x75   : > { %731 = vmatprep.subr.mxu1 %v975_v2 }
  0x76   : > { %732 = vmatpush3.msra.mxu1 %v472_v15 }
  0x77   : > { %733 = vmatprep.subr.mxu1 %v975_v2 }
  0x78   : > { %734 = vmatpush3.msra.mxu1 %v471_v16 }
  0x79   : > { %735 = vmatprep.subr.mxu1 %v975_v2 }
  0x7a   : > { %736 = vmatpush3.msra.mxu1 %v470_v17 }
  0x7b   : > { %737 = vmatprep.subr.mxu1 %v975_v2 }
  0x7c   : > { %738 = vmatpush3.msra.mxu1 %v469_v18 }
  0x7d   : > { %739 = vmatprep.subr.mxu1 %v975_v2 }
  0x7e   : > { %740 = vmatpush3.msra.mxu1 %v468_v19 }
  0x7f   : > { %741 = vmatprep.subr.mxu1 %v975_v2 }
  0x80   : > { %742 = vmatpush3.msra.mxu1 %v467_v20 }
  0x81   : > { %743 = vmatprep.subr.mxu1 %v975_v2 }
  0x82   : > { %744 = vmatpush3.msra.mxu1 %v466_v21 }
  0x83   : > { %745 = vmatprep.subr.mxu1 %v975_v2 }
  0x84   : > { %746 = vmatpush3.msra.mxu1 %v465_v22 }
 0x12b   : > { %v423_v23 = vpop.f32.mrf.mxu0 }
 0x12c   : > { %v427_v24 = vrot.slane %v423_v23, 4 }
 0x12d   : > { %v714_v25 = vpop.f32.mrf.mxu0 }
 0x12e   : > { %v428_v26 = vadd.f32 %v427_v24, %v423_v23 }
 0x130   : > { %v429_v27 = vrot.slane %v428_v26, 2 }
 0x132   : > { %v430_v28 = vadd.f32 %v429_v27, %v428_v26 }
 0x134   : > { %v431_v29 = vrot.slane %v430_v28, 1 }
 0x136   : > { %v432_v30 = vadd.f32 %v431_v29, %v430_v28 }
 0x138   : > { %v434_v31 = vmul.f32 0.125, %v432_v30 }
 0x13a   : > { %v435_v32 = vsub.f32 %v423_v23, %v434_v31 }
 0x13c   : > { %v436_v33 = vmul.f32 %v435_v32, %v435_v32 }
 0x13e   : > { %v437_v34 = vrot.slane %v436_v33, 4 }
 0x140   : > { %v438_v35 = vadd.f32 %v437_v34, %v436_v33 }
 0x142   : > { %v439_v36 = vrot.slane %v438_v35, 2 }
 0x144   : > { %v440_v37 = vadd.f32 %v439_v36, %v438_v35 }
 0x146   : > { %v441_v38 = vrot.slane %v440_v37, 1 }
 0x148   : > { %v442_v39 = vadd.f32 %v441_v38, %v440_v37 }
 0x14a   : > { %v443_v40 = vmul.f32 0.125, %v442_v39 }
 0x14c   : > { %v445_v41 = vadd.f32 1e-05, %v443_v40 }
 0x14e   : > { %817 = vrsqrt.f32 %v445_v41 }
 0x15b   : > { %v818_v46 = vpop.eup %817 }
 0x15c   : > { %v447_v47 = vmul.f32 %v818_v46, %v444_v44 }
 0x15e   : > { %v452_v48 = vrot.slane %v447_v47, %v451_v45 }
 0x160   : > { %v454_v50 = vmul.f32 %v452_v48, %v435_v32 }
 0x162   : > { %v462_v51 = vadd.f32 %v676_v49, %v454_v50 }
 0x164   : > { %v463_v52 = vmax.f32 %v462_v51, 0.0 }
 0x166   : > { %748 = vmatmul.mubr.f32.vlgmr.msra.gmra.mxu1 %v463_v52 }
 0x226   : > { %v547_v54 = vpop.f32.mrf.mxu1 }
 0x227   : > { %v551_v55 = vadd.f32 %v547_v54, %v464_v53 }
 0x228   : > { %v749_v56 = vpop.f32.mrf.mxu1 }
 0x229   : > { %552 = vst [vmem:[#allocation8] sm:$0xff] %v551_v55 }
 0x22a   : > { %914 = shalt.err (!%p911_p4)
}
 0x22b   : > { %759 = dma.vmem_to_hbm [thread:$0]  (%p776_p8), %s561_s11, 128, %s1271_s6, [#allocation4]  }
 0x22c   : > { %950 = dma.done.wait (%p776_p8), [#allocation4], 128  }
 0x22d   : > { %952 = vsyncadd (%p776_p8), [#allocation4], 4294967168 }
 0x22e PF: > { %p18_p0 = scmp.ge.s32.totalorder %s1034_s25, 4   ;;  %s1282_s21 = smov %s959_s22 }
 0x22f   : > { %s1283_s22 = smov %s963_s23  ;;  %s1284_s23 = smov %s1044_s28 }
 0x230   : > { %s1285_s24 = smov %s1034_s25  ;;  %20 = sbr.rel (!%p18_p0) target bundleno = 5 (0x5), region = 107 }
 0x235   :  { %573 = vsyncpa [#allocation3], 1 }
 0x236   :  { %575 = vsyncpa [#allocation3 + $0x1], 1 }
 0x237   :  { %576 = vsyncpa [#allocation6], 1 }
 0x238   :  { %578 = vsyncpa [#allocation6 + $0x1], 1 }
 0x239   :  { %579 = vsyncpa [#allocation4], 1 }
 0x23a   :  { %581 = vsyncpa [#allocation4 + $0x1], 1 }

// kernel: tpu_custom_call.1
= control target key start
LH: loop header
LB: loop body
LE: loop exit
PB: predicated region body
PF: predicated region fallthrough
CT: control target
= control target key end

     0   :  { %11 = vsyncpa [#allocation3], 0  ;;  %s1265_s0 = inlined_call_operand.hbm [shape: f32[8,32], index: 0, kind: input, shape index: {}]   ;;  %s1266_s1 = inlined_call_operand.hbm [shape: f32[32,256], index: 1, kind: input, shape index: {}]   ;;  %s1267_s2 = inlined_call_operand.vmem [shape: f32[1,256], index: 2, kind: input, shape index: {}]   ;;  %s1268_s3 = inlined_call_operand.vmem [shape: f32[1,256], index: 3, kind: input, shape index: {}]   ;;  %s1269_s4 = inlined_call_operand.hbm [shape: f32[256,128], index: 4, kind: input, shape index: {}]   ;;  %s1270_s5 = inlined_call_operand.vmem [shape: f32[1,128], index: 5, kind: input, shape index: {}]   ;;  %s1271_s6 = inlined_call_operand.hbm [shape: f32[8,128], index: 6, kind: output, shape index: {}]  }
   0x1   :  { %12 = vsyncpa [#allocation6], 0 }
   0x2   :  { %14 = vsyncpa [#allocation6 + $0x1], 0 }
   0x3   :  { %15 = vsyncpa [#allocation4], 0  ;;  %s1013_s21 = smov 0   ;;  %s1015_s22 = smov 0  }
   0x4   :  { %s1017_s23 = smov 0   ;;  %s1019_s24 = smov 0  }
   0x5 LB: > { %s1034_s25 = sadd.s32 1, %s967_s24   ;;  %s49_s26 = sadd.s32 1, %s963_s23  ;;  %s967_s24 = sphi %s1019_s24, %s1285_s24   ;;  %s963_s23 = sphi %s1017_s23, %s1284_s23   ;;  %s959_s22 = sphi %s1015_s22, %s1283_s22   ;;  %s955_s21 = sphi %s1013_s21, %s1282_s21  }
   0x6   : > { %s46_s27 = ssub.s32 %s967_s24, %s1034_s25  ;;  %p56_p0 = scmp.ne.s32.totalorder %s963_s23, %s959_s22 }
   0x7   : > { %p47_p1 = scmp.eq.s32.totalorder %s46_s27, 0  ;;  %p57_p2 = scmp.eq.s32.totalorder %s967_s24, 0 }
   0x8   : > { %p774_p3 = scmp.lt.s32.totalorder %s967_s24, 2  ;;  %s220_s29 = sand.u32 1, %s967_s24  }
   0x9   : > { %s1044_s28 = scalar_select %p47_p1, %s963_s23, %s49_s26  }
   0xa   : > { %p58_p4 = por %p57_p2, %p56_p0  ;;  %s222_s30 = sand.u32 1, %s963_s23  }
   0xb   : > { %s664_s7 = sshll.u32 %s222_s30, 5  ;;  %s665_s8 = sshll.u32 %s967_s24, 7 }
   0xc   : > { %s1054_s11 = scalar_lea.hbm %s1266_s1, %s665_s8  ;;  %s224_s12 = scalar_lea.vmem [#allocation5], %s664_s7 }
   0xd   : > { %s230_s13 = sshll.u32 %s224_s12, 4  ;;  %p1056_p5 = pnand %p774_p3, %p58_p4  ;;  %s1060_s13 = int_to_ptr.vmem [resolvable:$true] %s230_s13 }
   0xe   : > { %s1062_s15 = scalar_lea.sflag [#allocation6], %s220_s29  ;;  %s819_s16 = scalar_lea.hbm %s1054_s11, 512 }
   0xf   : > { %p820_p6 = scmp.ne.s32.totalorder %s1054_s11, %s819_s16  ;;  %p821_p7 = pneg %p1056_p5 }
  0x10   : > { %s824_s19 = scalar_lea.hbm %s1266_s1, 1024  ;;  %p825_p10 = scmp.lt.s32.totalorder %s1054_s11, %s1266_s1 }
  0x11   : > { %p822_p8 = pnand %p821_p7, %p820_p6  ;;  %p826_p11 = scmp.lt.s32.totalorder %s824_s19, %s819_s16 }
  0x13   : > { %p823_p9 = pneg %p822_p8  ;;  %p827_p12 = por %p826_p11, %p825_p10 }
  0x15   : > { %p828_p13 = pnand %p827_p12, %p823_p9 }
  0x17   : > { %831 = shalt.err (!%p828_p13)
}
  0x18   : > { %s832_s27 = scalar_lea.vmem %s1060_s13, 512  ;;  %s969_s29 = smov [#allocation5]  }
  0x19   : > { %p833_p0 = scmp.ne.s32.totalorder %s1060_s13, %s832_s27  ;;  %s837_s7 = sshll.u32 %s969_s29, 4  ;;  %s838_s7 = int_to_ptr.vmem [resolvable:$false] %s837_s7 }
  0x1a   : > { %s839_s8 = scalar_lea.vmem %s838_s7, 1024  ;;  %p840_p3 = scmp.lt.s32.totalorder %s1060_s13, %s838_s7 }
  0x1b   : > { %p835_p1 = pnand %p833_p0, %p821_p7  ;;  %p841_p4 = scmp.lt.s32.totalorder %s839_s8, %s832_s27 }
  0x1d   : > { %p836_p2 = pneg %p835_p1  ;;  %p842_p6 = por %p841_p4, %p840_p3 }
  0x1f   : > { %p843_p8 = pnand %p842_p6, %p836_p2 }
  0x21   : > { %846 = shalt.err (!%p843_p8)
}
  0x22   : > { %s970_s9 = smov 256   ;;  %s971_s10 = smov 128  }
  0x23   : > { %s972_s12 = smov 8   ;;  %s1092_s16 = sadd.s32 4294967295, %s967_s24  }
  0x24   : > { %769 = dma.hbm_to_vmem [thread:$0]  (!%p1056_p5), %s1054_s11, 512, %s1060_s13, %s1062_s15, %s970_s9, %s971_s10, %s972_s12  }
  0x25   : > { %p62_p9 = scmp.ne.s32.totalorder %s959_s22, %s955_s21  ;;  %p1272_p10 = scmp.eq.s32.totalorder %s1092_s16, 0 }
  0x26   : > { %p661_p11 = scmp.ge.s32.totalorder %s967_s24, 1  ;;  %p193_p12 = scmp.lt.s32.totalorder %s967_s24, 3 }
  0x27   : > { %p1101_p13 = por %p1272_p10, %p62_p9  ;;  %s973_s11 = smov [#allocation2]  }
  0x28   : > { %p1106_p1 = pnand %p661_p11, %p193_p12  ;;  %s206_s13 = sshll.u32 %s973_s11, 4  ;;  %s207_s13 = int_to_ptr.vmem [resolvable:$true] %s206_s13 }
  0x29   : > { %s1275_s17 = scalar_select %p1101_p13, 1, 0 }
  0x2a   : > { %s666_s19 = sshll.u32 %s222_s30, 7  ;;  %p762_p2 = pneg %p1106_p1 }
  0x2b   : > { %s681_s21 = sshll.u32 %s967_s24, 11  ;;  %s256_s7 = scalar_lea.vmem [#allocation7], %s666_s19 }
  0x2c   : > { %p1117_p3 = pnand %p762_p2, %p1272_p10  ;;  %s1124_s29 = scalar_lea.hbm %s1269_s4, %s681_s21 }
  0x2d   : > { %s263_s8 = sshll.u32 %s256_s7, 4  ;;  %s858_s30 = scalar_lea.vmem %s207_s13, 128  ;;  %s1126_s8 = int_to_ptr.vmem [resolvable:$true] %s263_s8 }
  0x2e   : > { %p849_p4 = pneg %p1117_p3  ;;  %p859_p6 = scmp.ne.s32.totalorder %s207_s13, %s858_s30 }
  0x2f   : > { %p866_p11 = scmp.lt.s32.totalorder %s207_s13, %s207_s13  ;;  %p867_p12 = scmp.lt.s32.totalorder %s858_s30, %s858_s30 }
  0x30   : > { %p861_p8 = pnand %p859_p6, %p849_p4 }
  0x31   : > { %p868_p2 = por %p867_p12, %p866_p11 }
  0x32   : > { %p862_p9 = pneg %p861_p8 }
  0x34   : > { %p869_p0 = pnand %p868_p2, %p862_p9 }
  0x36   : > { %872 = shalt.err (!%p869_p0)
}
  0x37   : > { %765 = dma.hbm_to_vmem [thread:$0]  (!%p1117_p3), %s1265_s0, 128, %s207_s13, [#allocation3]  }
  0x38   : > { %s873_s11 = scalar_lea.hbm %s1124_s29, 2048  ;;  %s878_s26 = scalar_lea.hbm %s1269_s4, 4096 }
  0x39   : > { %p874_p10 = scmp.ne.s32.totalorder %s1124_s29, %s873_s11  ;;  %p879_p0 = scmp.lt.s32.totalorder %s1124_s29, %s1269_s4 }
  0x3a   : > { %p880_p8 = scmp.lt.s32.totalorder %s878_s26, %s873_s11 }
  0x3b   : > { %p876_p4 = pnand %p874_p10, %p821_p7 }
  0x3c   : > { %p881_p9 = por %p880_p8, %p879_p0 }
  0x3d   : > { %p877_p6 = pneg %p876_p4 }
  0x3f   : > { %p882_p11 = pnand %p881_p9, %p877_p6 }
  0x41   : > { %885 = shalt.err (!%p882_p11)
}
  0x42   : > { %s886_s13 = scalar_lea.vmem %s1126_s8, 2048  ;;  %s974_s7 = smov [#allocation7]  }
  0x43   : > { %p887_p3 = scmp.ne.s32.totalorder %s1126_s8, %s886_s13  ;;  %s891_s30 = sshll.u32 %s974_s7, 4  ;;  %s892_s30 = int_to_ptr.vmem [resolvable:$false] %s891_s30 }
  0x44   : > { %s893_s24 = scalar_lea.vmem %s892_s30, 4096  ;;  %p894_p2 = scmp.lt.s32.totalorder %s1126_s8, %s892_s30 }
  0x45   : > { %p889_p10 = pnand %p887_p3, %p821_p7  ;;  %p895_p4 = scmp.lt.s32.totalorder %s893_s24, %s886_s13 }
  0x47   : > { %p890_p12 = pneg %p889_p10  ;;  %p896_p13 = por %p895_p4, %p894_p2 }
  0x49   : > { %p897_p0 = pnand %p896_p13, %p890_p12 }
  0x4b   : > { %900 = shalt.err (!%p897_p0)
}
  0x4c   : > { %772 = dma.hbm_to_vmem [thread:$0]  (!%p1056_p5), %s1124_s29, 2048, %s1126_s8, %s1062_s15, %s971_s10, %s971_s10, %s972_s12  }
  0x4d   : > { %275 = sbr.rel (%p1106_p1) target bundleno = 558 (0x22e), region = 44  ;;  %p1278_p7 = scmp.eq.s32.totalorder (!%p1106_p1), %s1092_s16, 0 }
  0x52   : > { %942 = dma.done.wait (%p1278_p7), [#allocation3], 128   ;;  %p1279_p6 = pmov %p1278_p7 }
  0x53   : > { %s281_s14 = sand.u32 1, %s1092_s16   ;;  %s283_s9 = sand.u32 1, %s959_s22  }
  0x54   : > { %944 = vsyncadd (%p1279_p6), [#allocation3], 4294967168  ;;  %s671_s11 = sshll.u32 %s283_s9, 5  ;;  %s282_s19 = scalar_lea.sflag [#allocation6], %s281_s14 }
  0x55   : > { %s285_s21 = scalar_lea.vmem [#allocation5], %s671_s11  ;;  %p1280_p13 = scmp.ne.s32.totalorder %s1275_s17, 0 }
  0x57   : > { %946 = dma.done.wait (%p1280_p13), %s282_s19, 2560  }
  0x58   : > { %948 = vsyncadd (%p1280_p13), %s282_s19, 4294964736  ;;  %s672_s15 = sshll.u32 %s283_s9, 7  ;;  %p329_p5 = scmp.lt.s32.totalorder %s1092_s16, 1 }
  0x59   : > { %s1185_s20 = scalar_lea.vmem [#allocation7], %s672_s15  ;;  %p1281_p1 = scmp.ne.s32.totalorder %s1092_s16, 0 }
  0x5a   : > { %s1175_s10 = scalar_select %p329_p5, %s1092_s16, 1 }
  0x5b   : > { %339 = sbr.rel (%p1281_p1) target bundleno = 98 (0x62), region = 60 }
  0x5c   : > { %s331_s29 = scalar_lea.vmem %s1267_s2, %s1175_s10  ;;  %s334_s27 = scalar_lea.vmem %s1268_s3, %s1175_s10 }
  0x60   : > { %v674_v0 = vld [vmem:[%s1270_s5] ss:$0 sm:$0xff] }
  0x61   : > { %347 = vst [vmem:[#allocation8] sm:$0xff] %v674_v0 }
  0x62 PF: > { %v352_v1 = vld [vmem:[%s285_s21 + $0x18] sm:$0xff]  ;;  %v975_v2 = vmov 0.0   ;;  %v351_v3 = vld [vmem:[%s285_s21 + $0x10] sm:$0xff]  ;;  %vm976_vm0 = vmmov 0   ;;  %v350_v4 = vld [vmem:[%s285_s21 + $0x8] sm:$0xff]  ;;  %vm353_vm1 = vcmask 261120   ;;  %v449_v42 = vlaneseq }
  0x63   : > { %704 = vmatprep.subr.mxu0 %v975_v2  ;;  %712 = vmatprep.mubr.msk.f32.mxu0 %vm976_vm0, %v975_v2  ;;  %v349_v5 = vld [vmem:[%s285_s21] sm:$0xff]  ;;  %v348_v6 = vld [vmem:[#allocation2] sm:$0xff]  ;;  %v479_v8 = vld [vmem:[%s1185_s20 + $0x70] sm:$0xff]  ;;  %s977_s9 = smov [#allocation8]   ;;  %p776_p8 = scmp.eq.s32.totalorder %s1092_s16, 1 }
  0x64   : > { %705 = vmatpush3.msra.mxu0 %v352_v1  ;;  %715 = vmatprep.subr.mxu1 %v975_v2  ;;  %v480_v7 = vld [vmem:[%s1185_s20 + $0x78] sm:$0xff]  ;;  %v478_v9 = vld [vmem:[%s1185_s20 + $0x68] sm:$0xff]  ;;  %v477_v10 = vld [vmem:[%s1185_s20 + $0x60] sm:$0xff]  ;;  %v450_v43 = vshrl.u32 %v449_v42, 7  ;;  %s560_s11 = sshll.u32 %s977_s9, 4  ;;  %s561_s11 = int_to_ptr.vmem [resolvable:$true] %s560_s11 }
  0x65   : > { %706 = vmatprep.subr.mxu0 %v975_v2  ;;  %747 = vmatprep.mubr.msk.f32.mxu1 %vm976_vm0, %v975_v2  ;;  %v476_v11 = vld [vmem:[%s1185_s20 + $0x58] sm:$0xff]  ;;  %v475_v12 = vld [vmem:[%s1185_s20 + $0x50] sm:$0xff]  ;;  %v474_v13 = vld [vmem:[%s1185_s20 + $0x48] sm:$0xff]  ;;  %s901_s19 = scalar_lea.vmem %s561_s11, 128  ;;  %p908_p10 = scmp.lt.s32.totalorder %s561_s11, %s561_s11 }
  0x66   : > { %707 = vmatpush3.msra.mxu0 %v351_v3  ;;  %716 = vmatpush3.msra.mxu1 %v480_v7  ;;  %v473_v14 = vld [vmem:[%s1185_s20 + $0x40] sm:$0xff]  ;;  %v472_v15 = vld [vmem:[%s1185_s20 + $0x38] sm:$0xff]  ;;  %v471_v16 = vld [vmem:[%s1185_s20 + $0x30] sm:$0xff]  ;;  %v451_v45 = vsub.s32 0, %v450_v43  ;;  %p902_p9 = scmp.ne.s32.totalorder %s561_s11, %s901_s19  ;;  %p909_p12 = scmp.lt.s32.totalorder %s901_s19, %s901_s19 }
  0x67   : > { %708 = vmatprep.subr.mxu0 %v975_v2  ;;  %717 = vmatprep.subr.mxu1 %v975_v2  ;;  %v470_v17 = vld [vmem:[%s1185_s20 + $0x28] sm:$0xff]  ;;  %v469_v18 = vld [vmem:[%s1185_s20 + $0x20] sm:$0xff]  ;;  %v468_v19 = vld [vmem:[%s1185_s20 + $0x18] sm:$0xff] }
  0x68   : > { %709 = vmatpush3.msra.mxu0 %v350_v4  ;;  %718 = vmatpush3.msra.mxu1 %v479_v8  ;;  %v467_v20 = vld [vmem:[%s1185_s20 + $0x10] sm:$0xff]  ;;  %v466_v21 = vld [vmem:[%s1185_s20 + $0x8] sm:$0xff]  ;;  %v465_v22 = vld [vmem:[%s1185_s20] sm:$0xff]  ;;  %p903_p11 = pnand %p902_p9, %p776_p8  ;;  %p910_p2 = por %p909_p12, %p908_p10 }
  0x69   : > { %710 = vmatprep.subr.mxu0 %v975_v2  ;;  %719 = vmatprep.subr.mxu1 %v975_v2  ;;  %v444_v44 = vld [vmem:[%s331_s29] sm:$0x1]  ;;  %v464_v53 = vld [vmem:[#allocation8] sm:$0xff] }
  0x6a   : > { %711 = vmatpush3.msra.mxu0 %v349_v5  ;;  %720 = vmatpush3.msra.mxu1 %v478_v9  ;;  %v676_v49 = vld [vmem:[%s334_s27] ss:$0 sm:$0xff]  ;;  %p904_p3 = pneg %p903_p11 }
  0x6b   : > { %713 = vmatmul.mubr.msk.f32.vlgmr.msra.gmra.mxu0 %vm353_vm1, %v348_v6  ;;  %721 = vmatprep.subr.mxu1 %v975_v2 }
  0x6c   : > { %722 = vmatpush3.msra.mxu1 %v477_v10  ;;  %p911_p4 = pnand %p910_p2, %p904_p3 }
  0x6d   : > { %723 = vmatprep.subr.mxu1 %v975_v2 }
  0x6e   : > { %724 = vmatpush3.msra.mxu1 %v476_v11 }
  0x6f   : > { %725 = vmatprep.subr.mxu1 %v975_v2 }
  0x70   : > { %726 = vmatpush3.msra.mxu1 %v475_v12 }
  0x71   : > { %727 = vmatprep.subr.mxu1 %v975_v2 }
  0x72   : > { %728 = vmatpush3.msra.mxu1 %v474_v13 }
  0x73   : > { %729 = vmatprep.subr.mxu1 %v975_v2 }
  0x74   : > { %730 = vmatpush3.msra.mxu1 %v473_v14 }
  0x75   : > { %731 = vmatprep.subr.mxu1 %v975_v2 }
  0x76   : > { %732 = vmatpush3.msra.mxu1 %v472_v15 }
  0x77   : > { %733 = vmatprep.subr.mxu1 %v975_v2 }
  0x78   : > { %734 = vmatpush3.msra.mxu1 %v471_v16 }
  0x79   : > { %735 = vmatprep.subr.mxu1 %v975_v2 }
  0x7a   : > { %736 = vmatpush3.msra.mxu1 %v470_v17 }
  0x7b   : > { %737 = vmatprep.subr.mxu1 %v975_v2 }
  0x7c   : > { %738 = vmatpush3.msra.mxu1 %v469_v18 }
  0x7d   : > { %739 = vmatprep.subr.mxu1 %v975_v2 }
  0x7e   : > { %740 = vmatpush3.msra.mxu1 %v468_v19 }
  0x7f   : > { %741 = vmatprep.subr.mxu1 %v975_v2 }
  0x80   : > { %742 = vmatpush3.msra.mxu1 %v467_v20 }
  0x81   : > { %743 = vmatprep.subr.mxu1 %v975_v2 }
  0x82   : > { %744 = vmatpush3.msra.mxu1 %v466_v21 }
  0x83   : > { %745 = vmatprep.subr.mxu1 %v975_v2 }
  0x84   : > { %746 = vmatpush3.msra.mxu1 %v465_v22 }
 0x12b   : > { %v423_v23 = vpop.f32.mrf.mxu0 }
 0x12c   : > { %v427_v24 = vrot.slane %v423_v23, 4 }
 0x12d   : > { %v714_v25 = vpop.f32.mrf.mxu0 }
 0x12e   : > { %v428_v26 = vadd.f32 %v427_v24, %v423_v23 }
 0x130   : > { %v429_v27 = vrot.slane %v428_v26, 2 }
 0x132   : > { %v430_v28 = vadd.f32 %v429_v27, %v428_v26 }
 0x134   : > { %v431_v29 = vrot.slane %v430_v28, 1 }
 0x136   : > { %v432_v30 = vadd.f32 %v431_v29, %v430_v28 }
 0x138   : > { %v434_v31 = vmul.f32 0.125, %v432_v30 }
 0x13a   : > { %v435_v32 = vsub.f32 %v423_v23, %v434_v31 }
 0x13c   : > { %v436_v33 = vmul.f32 %v435_v32, %v435_v32 }
 0x13e   : > { %v437_v34 = vrot.slane %v436_v33, 4 }
 0x140   : > { %v438_v35 = vadd.f32 %v437_v34, %v436_v33 }
 0x142   : > { %v439_v36 = vrot.slane %v438_v35, 2 }
 0x144   : > { %v440_v37 = vadd.f32 %v439_v36, %v438_v35 }
 0x146   : > { %v441_v38 = vrot.slane %v440_v37, 1 }
 0x148   : > { %v442_v39 = vadd.f32 %v441_v38, %v440_v37 }
 0x14a   : > { %v443_v40 = vmul.f32 0.125, %v442_v39 }
 0x14c   : > { %v445_v41 = vadd.f32 1e-05, %v443_v40 }
 0x14e   : > { %817 = vrsqrt.f32 %v445_v41 }
 0x15b   : > { %v818_v46 = vpop.eup %817 }
 0x15c   : > { %v447_v47 = vmul.f32 %v818_v46, %v444_v44 }
 0x15e   : > { %v452_v48 = vrot.slane %v447_v47, %v451_v45 }
 0x160   : > { %v454_v50 = vmul.f32 %v452_v48, %v435_v32 }
 0x162   : > { %v462_v51 = vadd.f32 %v676_v49, %v454_v50 }
 0x164   : > { %v463_v52 = vmax.f32 %v462_v51, 0.0 }
 0x166   : > { %748 = vmatmul.mubr.f32.vlgmr.msra.gmra.mxu1 %v463_v52 }
 0x226   : > { %v547_v54 = vpop.f32.mrf.mxu1 }
 0x227   : > { %v551_v55 = vadd.f32 %v547_v54, %v464_v53 }
 0x228   : > { %v749_v56 = vpop.f32.mrf.mxu1 }
 0x229   : > { %552 = vst [vmem:[#allocation8] sm:$0xff] %v551_v55 }
 0x22a   : > { %914 = shalt.err (!%p911_p4)
}
 0x22b   : > { %759 = dma.vmem_to_hbm [thread:$0]  (%p776_p8), %s561_s11, 128, %s1271_s6, [#allocation4]  }
 0x22c   : > { %950 = dma.done.wait (%p776_p8), [#allocation4], 128  }
 0x22d   : > { %952 = vsyncadd (%p776_p8), [#allocation4], 4294967168 }
 0x22e PF: > { %p18_p0 = scmp.ge.s32.totalorder %s1034_s25, 4   ;;  %s1282_s21 = smov %s959_s22 }
 0x22f   : > { %s1283_s22 = smov %s963_s23  ;;  %s1284_s23 = smov %s1044_s28 }
 0x230   : > { %s1285_s24 = smov %s1034_s25  ;;  %20 = sbr.rel (!%p18_p0) target bundleno = 5 (0x5), region = 107 }
 0x235   :  { %573 = vsyncpa [#allocation3], 1 }
 0x236   :  { %575 = vsyncpa [#allocation3 + $0x1], 1 }
 0x237   :  { %576 = vsyncpa [#allocation6], 1 }
 0x238   :  { %578 = vsyncpa [#allocation6 + $0x1], 1 }
 0x239   :  { %579 = vsyncpa [#allocation4], 1 }
 0x23a   :  { %581 = vsyncpa [#allocation4 + $0x1], 1 }

</bundles_post_ra>
